<compile_context>
chip_gen: v7x
topology: tpu7x:2x2x1
jax: 0.10.0
libtpu: 0.0.40
codegen_flags: <defaults>
</compile_context>

<pallas_src>
import jax
import jax.numpy as jnp
from jax.experimental import pallas as pl
from jax.experimental.pallas import tpu as pltpu

_HP = 64   # padded hidden size (2*HP = 128 lanes = one full vreg lane width)
_BP = 8    # padded batch (one full sublane tile)


def _rnn_kernel(x_ref,       # (S*Bp, I)   time-major, batch-padded input
                wih0_ref,    # (I, Hp)     W_ih0^T  (zero-padded)
                b0_ref,      # (1, Hp)     b_ih0 + b_hh0
                wbig_ref,    # (2Hp, 2Hp)  [[W_hh0^T, W_ih1^T],[0, W_hh1^T]]
                w1_ref,      # (2Hp, Hp)   [W_ih1^T ; W_hh1^T]  (right block of Wbig)
                b1_ref,      # (1, Hp)     b_ih1 + b_hh1
                wfc_ref,     # (Hp, O)     W_fc^T  (zero-padded rows)
                bfc_ref,     # (1, O)
                out_ref):    # (Bp, O)
    f32 = jnp.float32
    Bp, O = out_ref.shape
    Hp = wbig_ref.shape[0] // 2
    S = x_ref.shape[0] // Bp

    # ---- Hoisted loop-invariant loads / broadcasts (done once) ------------
    wbig = wbig_ref[...]                                    # (2Hp, 2Hp)
    w1 = w1_ref[...]                                        # (2Hp, Hp)
    b1 = jnp.broadcast_to(b1_ref[...], (Bp, Hp))            # (Bp, Hp)

    # ---- One matmul projects the WHOLE sequence (off the serial chain) ----
    # xproj[i*Bp:(i+1)*Bp] = x_i @ W_ih0^T + (b_ih0 + b_hh0)
    xproj = (jnp.dot(x_ref[...], wih0_ref[...],
                     preferred_element_type=f32)
             + b0_ref[...])                                 # (S*Bp, Hp)

    # s_0 = [h0_0 | h1_{-1}] = [tanh(xproj_0) | 0]
    s = jnp.concatenate(
        [jnp.tanh(xproj[0:Bp, :]), jnp.zeros((Bp, Hp), f32)], axis=-1)  # (Bp, 2Hp)

    # Precompute the per-step additive slab for steps 1..S-1: [xproj_i | b1]
    if S > 1:
        slab = jnp.concatenate(
            [xproj[Bp:S * Bp, :],
             jnp.broadcast_to(b1_ref[...], ((S - 1) * Bp, Hp))],
            axis=-1)                                        # ((S-1)*Bp, 2Hp)

    # ---- Recurrence: ONE fused (Bp,2Hp)@(2Hp,2Hp) dot + ONE tanh per step -
    # s_i = tanh(s_{i-1} @ Wbig + [xproj_i | b1])  ->  [h0_i | h1_{i-1}]
    for i in range(1, S):
        add_i = slab[(i - 1) * Bp:i * Bp, :]                # static, aligned slice
        s = jnp.tanh(jnp.dot(s, wbig, preferred_element_type=f32) + add_i)

    # ---- Final half step: h1_{S-1} = tanh([h0_{S-1}|h1_{S-2}] @ [Wih1^T;Whh1^T] + b1)
    h1_last = jnp.tanh(jnp.dot(s, w1, preferred_element_type=f32) + b1)  # (Bp, Hp)

    # ---- FC + sigmoid ------------------------------------------------------
    logits = (jnp.dot(h1_last, wfc_ref[...], preferred_element_type=f32)
              + bfc_ref[...])                               # (Bp, O)
    out_ref[...] = jax.nn.sigmoid(logits).astype(out_ref.dtype)


def prepare_params(params, hp=_HP):
    """One-time weight prep: transpose, bias folds, zero-pad H->hp, and build
    the block-upper-triangular fused recurrent weight Wbig."""
    f32 = jnp.float32
    H = params["w_hh0"].shape[0]
    I = params["w_ih0"].shape[1]
    O = params["w_fc"].shape[0]
    assert hp >= H

    def pad2(a, rows, cols):
        a = jnp.asarray(a, f32)
        return jnp.zeros((rows, cols), f32).at[:a.shape[0], :a.shape[1]].set(a)

    wih0 = pad2(params["w_ih0"].T, I, hp)                                   # (I, Hp)
    b0 = pad2((params["b_ih0"] + params["b_hh0"]).reshape(1, H), 1, hp)     # (1, Hp)
    b1 = pad2((params["b_ih1"] + params["b_hh1"]).reshape(1, H), 1, hp)     # (1, Hp)

    whh0 = pad2(params["w_hh0"].T, hp, hp)
    wih1 = pad2(params["w_ih1"].T, hp, hp)
    whh1 = pad2(params["w_hh1"].T, hp, hp)

    # Wbig = [[W_hh0^T, W_ih1^T], [0, W_hh1^T]]  (rows = [h0|h1] of the state)
    wbig = jnp.zeros((2 * hp, 2 * hp), f32)
    wbig = wbig.at[:hp, :hp].set(whh0)
    wbig = wbig.at[:hp, hp:].set(wih1)
    wbig = wbig.at[hp:, hp:].set(whh1)
    w1 = wbig[:, hp:]                                                       # (2Hp, Hp)

    wfc = pad2(params["w_fc"].T, hp, O)                                     # (Hp, O)
    bfc = jnp.asarray(params["b_fc"], f32).reshape(1, O)
    return {"wih0": wih0, "b0": b0, "wbig": wbig, "w1": w1,
            "b1": b1, "wfc": wfc, "bfc": bfc}


@jax.jit
def rnn_model_forward(x, prep):
    """x: (B, S, I) float32 (PyTorch batch_first layout). Returns (B, O)."""
    B, S, I = x.shape
    Hp = prep["wbig"].shape[0] // 2
    O = prep["wfc"].shape[1]
    Bp = max(_BP, ((B + 7) // 8) * 8)

    # Per-call glue (fused by XLA into one tiny op): time-major relayout and
    # zero-pad the batch so every per-step tile is a full (8,128) vreg.
    x_tm = jnp.transpose(x.astype(jnp.float32), (1, 0, 2))                  # (S, B, I)
    x_pad = jnp.zeros((S, Bp, I), jnp.float32).at[:, :B, :].set(x_tm)
    x_flat = x_pad.reshape(S * Bp, I)

    flops = 2 * (S * Bp * I * Hp                 # input projection
                 + (S - 1) * Bp * 2 * Hp * 2 * Hp  # fused recurrent dots
                 + Bp * 2 * Hp * Hp                # final half step
                 + Bp * Hp * O)                    # FC
    transcendentals = S * Bp * 2 * Hp + Bp * O
    bytes_accessed = 4 * (x_flat.size + I * Hp + 2 * Hp
                          + (2 * Hp) * (2 * Hp) + 2 * Hp * Hp
                          + Hp * O + O + Bp * O)

    vmem = pl.BlockSpec(memory_space=pltpu.MemorySpace.VMEM)
    out = pl.pallas_call(
        _rnn_kernel,
        out_shape=jax.ShapeDtypeStruct((Bp, O), jnp.float32),
        in_specs=[vmem] * 8,
        out_specs=vmem,
        cost_estimate=pl.CostEstimate(flops=flops,
                                      transcendentals=transcendentals,
                                      bytes_accessed=bytes_accessed),
    )(x_flat, prep["wih0"], prep["b0"], prep["wbig"], prep["w1"],
      prep["b1"], prep["wfc"], prep["bfc"])
    return out[:B]


def init_params(key, input_size=2, hidden_size=50, output_size=1):
    """Deterministic init matching PyTorch parameter shapes (uniform +/- 1/sqrt(H))."""
    ks = jax.random.split(key, 10)
    s = 1.0 / jnp.sqrt(hidden_size)
    u = lambda k, shape: jax.random.uniform(k, shape, jnp.float32, -s, s)
    return {
        "w_ih0": u(ks[0], (hidden_size, input_size)),
        "w_hh0": u(ks[1], (hidden_size, hidden_size)),
        "b_ih0": u(ks[2], (hidden_size,)),
        "b_hh0": u(ks[3], (hidden_size,)),
        "w_ih1": u(ks[4], (hidden_size, hidden_size)),
        "w_hh1": u(ks[5], (hidden_size, hidden_size)),
        "b_ih1": u(ks[6], (hidden_size,)),
        "b_hh1": u(ks[7], (hidden_size,)),
        "w_fc": u(ks[8], (output_size, hidden_size)),
        "b_fc": u(ks[9], (output_size,)),
    }


def reference_forward(x, params):
    """Pure-JAX reference of the PyTorch forward pass (for verification)."""
    B, S, I = x.shape
    H = params["w_hh0"].shape[0]
    h0 = jnp.zeros((B, H), jnp.float32)
    h1 = jnp.zeros((B, H), jnp.float32)
    for t in range(S):
        xt = x[:, t, :]
        h0 = jnp.tanh(xt @ params["w_ih0"].T + params["b_ih0"]
                      + h0 @ params["w_hh0"].T + params["b_hh0"])
        h1 = jnp.tanh(h0 @ params["w_ih1"].T + params["b_ih1"]
                      + h1 @ params["w_hh1"].T + params["b_hh1"])
    logits = h1 @ params["w_fc"].T + params["b_fc"]
    return jax.nn.sigmoid(logits)


if __name__ == "__main__":
    key = jax.random.PRNGKey(0)
    k_x, k_p = jax.random.split(key)

    batch, seq, input_size = 2, 8, 2
    hidden_size, output_size = 50, 1

    x = jax.random.normal(k_x, (batch, seq, input_size), jnp.float32)
    params = init_params(k_p, input_size, hidden_size, output_size)
    prep = prepare_params(params)          # one-time weight prep (not per call)

    out = rnn_model_forward(x, prep)
    out = jax.block_until_ready(out)

    ref = reference_forward(x, params)
    assert out.shape == (batch, output_size)
    assert jnp.allclose(out, ref, rtol=1e-3, atol=1e-3), (out, ref)

    print("KERNEL_OK")
</pallas_src>

<mosaic_0001>
module attributes {stable_mosaic.version = 11 : i64} {
  func.func @_rnn_kernel(%arg0: memref<64x2xf32, #tpu.memory_space<vmem>>, %arg1: memref<2x64xf32, #tpu.memory_space<vmem>>, %arg2: memref<1x64xf32, #tpu.memory_space<vmem>>, %arg3: memref<128x128xf32, #tpu.memory_space<vmem>>, %arg4: memref<128x64xf32, #tpu.memory_space<vmem>>, %arg5: memref<1x64xf32, #tpu.memory_space<vmem>>, %arg6: memref<64x1xf32, #tpu.memory_space<vmem>>, %arg7: memref<1x1xf32, #tpu.memory_space<vmem>>, %arg8: memref<8x1xf32, #tpu.memory_space<vmem>>) attributes {dimension_semantics = [], scalar_prefetch = 0 : i64, scratch_operands = 0 : i64, tpu.core_type = #tpu.core_type<tc>} {
    %c0 = arith.constant 0 : index
    %c0_0 = arith.constant 0 : index
    %0 = vector.load %arg3[%c0, %c0_0] : memref<128x128xf32, #tpu.memory_space<vmem>>, vector<128x128xf32>
    %c0_1 = arith.constant 0 : index
    %c0_2 = arith.constant 0 : index
    %1 = vector.load %arg4[%c0_1, %c0_2] : memref<128x64xf32, #tpu.memory_space<vmem>>, vector<128x64xf32>
    %c0_3 = arith.constant 0 : index
    %c0_4 = arith.constant 0 : index
    %2 = vector.load %arg5[%c0_3, %c0_4] : memref<1x64xf32, #tpu.memory_space<vmem>>, vector<1x64xf32>
    %3 = vector.shape_cast %2 : vector<1x64xf32> to vector<1x64xf32>
    %4 = vector.broadcast %3 : vector<1x64xf32> to vector<8x64xf32>
    %c0_5 = arith.constant 0 : index
    %c0_6 = arith.constant 0 : index
    %5 = vector.load %arg0[%c0_5, %c0_6] : memref<64x2xf32, #tpu.memory_space<vmem>>, vector<64x2xf32>
    %c0_7 = arith.constant 0 : index
    %c0_8 = arith.constant 0 : index
    %6 = vector.load %arg1[%c0_7, %c0_8] : memref<2x64xf32, #tpu.memory_space<vmem>>, vector<2x64xf32>
    %cst = arith.constant dense<0.000000e+00> : vector<64x64xf32>
    %7 = tpu.matmul %5, %6, %cst {dimension_numbers = #tpu.dot_dimension_numbers<[1], [0], [0], [1], [0, 0, 1, 1], [], []>} : vector<64x2xf32>, vector<2x64xf32>, vector<64x64xf32> -> vector<64x64xf32>
    %c0_9 = arith.constant 0 : index
    %c0_10 = arith.constant 0 : index
    %8 = vector.load %arg2[%c0_9, %c0_10] : memref<1x64xf32, #tpu.memory_space<vmem>>, vector<1x64xf32>
    %9 = vector.broadcast %8 : vector<1x64xf32> to vector<64x64xf32>
    %10 = arith.addf %7, %9 : vector<64x64xf32>
    %11 = vector.extract_strided_slice %10 {offsets = [0, 0], sizes = [8, 64], strides = [1, 1]} : vector<64x64xf32> to vector<8x64xf32>
    %12 = math.tanh %11 : vector<8x64xf32>
    %cst_11 = arith.constant 0.000000e+00 : f32
    %13 = vector.broadcast %cst_11 : f32 to vector<8x64xf32>
    %14 = tpu.concatenate %12, %13 in 1 : vector<8x64xf32>, vector<8x64xf32> -> vector<8x128xf32>
    %15 = vector.extract_strided_slice %10 {offsets = [8, 0], sizes = [56, 64], strides = [1, 1]} : vector<64x64xf32> to vector<56x64xf32>
    %c0_12 = arith.constant 0 : index
    %c0_13 = arith.constant 0 : index
    %16 = vector.load %arg5[%c0_12, %c0_13] : memref<1x64xf32, #tpu.memory_space<vmem>>, vector<1x64xf32>
    %17 = vector.shape_cast %16 : vector<1x64xf32> to vector<1x64xf32>
    %18 = vector.broadcast %17 : vector<1x64xf32> to vector<56x64xf32>
    %19 = tpu.concatenate %15, %18 in 1 : vector<56x64xf32>, vector<56x64xf32> -> vector<56x128xf32>
    %20 = vector.extract_strided_slice %19 {offsets = [0, 0], sizes = [8, 128], strides = [1, 1]} : vector<56x128xf32> to vector<8x128xf32>
    %cst_14 = arith.constant dense<0.000000e+00> : vector<8x128xf32>
    %21 = tpu.matmul %14, %0, %cst_14 {dimension_numbers = #tpu.dot_dimension_numbers<[1], [0], [0], [1], [0, 0, 1, 1], [], []>} : vector<8x128xf32>, vector<128x128xf32>, vector<8x128xf32> -> vector<8x128xf32>
    %22 = arith.addf %21, %20 : vector<8x128xf32>
    %23 = math.tanh %22 : vector<8x128xf32>
    %24 = vector.extract_strided_slice %19 {offsets = [8, 0], sizes = [8, 128], strides = [1, 1]} : vector<56x128xf32> to vector<8x128xf32>
    %cst_15 = arith.constant dense<0.000000e+00> : vector<8x128xf32>
    %25 = tpu.matmul %23, %0, %cst_15 {dimension_numbers = #tpu.dot_dimension_numbers<[1], [0], [0], [1], [0, 0, 1, 1], [], []>} : vector<8x128xf32>, vector<128x128xf32>, vector<8x128xf32> -> vector<8x128xf32>
    %26 = arith.addf %25, %24 : vector<8x128xf32>
    %27 = math.tanh %26 : vector<8x128xf32>
    %28 = vector.extract_strided_slice %19 {offsets = [16, 0], sizes = [8, 128], strides = [1, 1]} : vector<56x128xf32> to vector<8x128xf32>
    %cst_16 = arith.constant dense<0.000000e+00> : vector<8x128xf32>
    %29 = tpu.matmul %27, %0, %cst_16 {dimension_numbers = #tpu.dot_dimension_numbers<[1], [0], [0], [1], [0, 0, 1, 1], [], []>} : vector<8x128xf32>, vector<128x128xf32>, vector<8x128xf32> -> vector<8x128xf32>
    %30 = arith.addf %29, %28 : vector<8x128xf32>
    %31 = math.tanh %30 : vector<8x128xf32>
    %32 = vector.extract_strided_slice %19 {offsets = [24, 0], sizes = [8, 128], strides = [1, 1]} : vector<56x128xf32> to vector<8x128xf32>
    %cst_17 = arith.constant dense<0.000000e+00> : vector<8x128xf32>
    %33 = tpu.matmul %31, %0, %cst_17 {dimension_numbers = #tpu.dot_dimension_numbers<[1], [0], [0], [1], [0, 0, 1, 1], [], []>} : vector<8x128xf32>, vector<128x128xf32>, vector<8x128xf32> -> vector<8x128xf32>
    %34 = arith.addf %33, %32 : vector<8x128xf32>
    %35 = math.tanh %34 : vector<8x128xf32>
    %36 = vector.extract_strided_slice %19 {offsets = [32, 0], sizes = [8, 128], strides = [1, 1]} : vector<56x128xf32> to vector<8x128xf32>
    %cst_18 = arith.constant dense<0.000000e+00> : vector<8x128xf32>
    %37 = tpu.matmul %35, %0, %cst_18 {dimension_numbers = #tpu.dot_dimension_numbers<[1], [0], [0], [1], [0, 0, 1, 1], [], []>} : vector<8x128xf32>, vector<128x128xf32>, vector<8x128xf32> -> vector<8x128xf32>
    %38 = arith.addf %37, %36 : vector<8x128xf32>
    %39 = math.tanh %38 : vector<8x128xf32>
    %40 = vector.extract_strided_slice %19 {offsets = [40, 0], sizes = [8, 128], strides = [1, 1]} : vector<56x128xf32> to vector<8x128xf32>
    %cst_19 = arith.constant dense<0.000000e+00> : vector<8x128xf32>
    %41 = tpu.matmul %39, %0, %cst_19 {dimension_numbers = #tpu.dot_dimension_numbers<[1], [0], [0], [1], [0, 0, 1, 1], [], []>} : vector<8x128xf32>, vector<128x128xf32>, vector<8x128xf32> -> vector<8x128xf32>
    %42 = arith.addf %41, %40 : vector<8x128xf32>
    %43 = math.tanh %42 : vector<8x128xf32>
    %44 = vector.extract_strided_slice %19 {offsets = [48, 0], sizes = [8, 128], strides = [1, 1]} : vector<56x128xf32> to vector<8x128xf32>
    %cst_20 = arith.constant dense<0.000000e+00> : vector<8x128xf32>
    %45 = tpu.matmul %43, %0, %cst_20 {dimension_numbers = #tpu.dot_dimension_numbers<[1], [0], [0], [1], [0, 0, 1, 1], [], []>} : vector<8x128xf32>, vector<128x128xf32>, vector<8x128xf32> -> vector<8x128xf32>
    %46 = arith.addf %45, %44 : vector<8x128xf32>
    %47 = math.tanh %46 : vector<8x128xf32>
    %cst_21 = arith.constant dense<0.000000e+00> : vector<8x64xf32>
    %48 = tpu.matmul %47, %1, %cst_21 {dimension_numbers = #tpu.dot_dimension_numbers<[1], [0], [0], [1], [0, 0, 1, 1], [], []>} : vector<8x128xf32>, vector<128x64xf32>, vector<8x64xf32> -> vector<8x64xf32>
    %49 = arith.addf %48, %4 : vector<8x64xf32>
    %50 = math.tanh %49 : vector<8x64xf32>
    %c0_22 = arith.constant 0 : index
    %c0_23 = arith.constant 0 : index
    %51 = vector.load %arg6[%c0_22, %c0_23] : memref<64x1xf32, #tpu.memory_space<vmem>>, vector<64x1xf32>
    %cst_24 = arith.constant dense<0.000000e+00> : vector<8x1xf32>
    %52 = tpu.matmul %50, %51, %cst_24 {dimension_numbers = #tpu.dot_dimension_numbers<[1], [0], [0], [1], [0, 0, 1, 1], [], []>} : vector<8x64xf32>, vector<64x1xf32>, vector<8x1xf32> -> vector<8x1xf32>
    %c0_25 = arith.constant 0 : index
    %c0_26 = arith.constant 0 : index
    %53 = vector.load %arg7[%c0_25, %c0_26] : memref<1x1xf32, #tpu.memory_space<vmem>>, vector<1x1xf32>
    %54 = vector.broadcast %53 : vector<1x1xf32> to vector<8x1xf32>
    %55 = arith.addf %52, %54 : vector<8x1xf32>
    %56 = arith.negf %55 : vector<8x1xf32>
    %57 = math.exp %56 : vector<8x1xf32>
    %cst_27 = arith.constant 1.000000e+00 : f32
    %58 = vector.broadcast %cst_27 : f32 to vector<8x1xf32>
    %59 = arith.addf %58, %57 : vector<8x1xf32>
    %60 = arith.divf %58, %59 : vector<8x1xf32>
    %c0_28 = arith.constant 0 : index
    %c0_29 = arith.constant 0 : index
    %61 = vector.load %arg8[%c0_28, %c0_29] : memref<8x1xf32, #tpu.memory_space<vmem>>, vector<8x1xf32>
    tpu.vector_store %arg8[%c0_28, %c0_29], %60 {strides = array<i32>} : memref<8x1xf32, #tpu.memory_space<vmem>>, vector<8x1xf32>,
    return
  }
}

</mosaic_0001>

<bundles_post_ra>
// kernel: rnn_model_forward.1
= control target key start
LH: loop header
LB: loop body
LE: loop exit
PB: predicated region body
PF: predicated region fallthrough
CT: control target
= control target key end

     0   :  { %vm111_vm0 = vcmask 1041408   ;;  %vm86_vm1 = vcmask 15360   ;;  %v1613_v3 = vmov 0.0|0.0   ;;  %s1614_s16 = smov 64   ;;  %vm1615_vm2 = vmmov 0   ;;  %s2031_s1 = inlined_call_operand.vmem [shape: f32[2,64], index: 1, kind: input, shape index: {}]   ;;  %s2032_s0 = inlined_call_operand.vmem [shape: f32[64,2], index: 0, kind: input, shape index: {}]   ;;  %s2033_s5 = inlined_call_operand.vmem [shape: f32[1,64], index: 5, kind: input, shape index: {}]   ;;  %s2034_s3 = inlined_call_operand.vmem [shape: f32[128,128], index: 3, kind: input, shape index: {}]   ;;  %s2035_s2 = inlined_call_operand.vmem [shape: f32[1,64], index: 2, kind: input, shape index: {}]   ;;  %s2036_s4 = inlined_call_operand.vmem [shape: f32[128,64], index: 4, kind: input, shape index: {}]   ;;  %s2037_s6 = inlined_call_operand.vmem [shape: f32[64,1], index: 6, kind: input, shape index: {}]   ;;  %s2038_s7 = inlined_call_operand.<no memory space> [shape: f32[1,1], index: 7, kind: input, shape index: {}]   ;;  %s2039_s8 = inlined_call_operand.vmem [shape: f32[8,1], index: 8, kind: output, shape index: {}]  }
   0x1   :  { %v78_v0 = vld [vmem:[%s2031_s1] sm:$0x3]  ;;  %v71_v2 = vld [vmem:[%s2032_s0 + $0x8] sm:$0xff]  ;;  %1383 = vmatprep.subr.bf16.mxu1 %v1613_v3  ;;  %v33_v8 = vld [vmem:[%s2034_s3 + $0x10] sm:$0xff]  ;;  %v1616_v33 = vmov 0.0   ;;  %vm221_vm3 = vcmask 523264  }
   0x2   :  { %v70_v1 = vld [vmem:[%s2032_s0] sm:$0xff]  ;;  %1070 = vmatprep.subr.msk.mxu0 %vm111_vm0, %v78_v0  ;;  %v32_v6 = vld [vmem:[%s2034_s3 + $0x8] sm:$0xff]  ;;  %v34_v9 = vld [vmem:[%s2034_s3 + $0x18] sm:$0xff]  ;;  %1116 = vmatprep.mubr.msk.f32.mxu1 %vm1615_vm2, %v1616_v33  ;;  %vm895_vm4 = vcmask 7168  }
   0x3   :  { %1072 = vmatprep.mubr.msk.f32.mxu0 %vm86_vm1, %v70_v1  ;;  %v1676_v4 = vld [vmem:[%s2033_s5] ss:$0 sm:$0xff]  ;;  %1071 = vmatpush3.msk.msra.mxu0 %vm111_vm0, %v78_v0  ;;  %v1696_v10 = vpack.c.bf16 %v34_v9, %v33_v8  ;;  %v36_v12 = vld [vmem:[%s2034_s3 + $0x28] sm:$0xff]  ;;  %v37_v14 = vld [vmem:[%s2034_s3 + $0x30] sm:$0xff] }
   0x4   :  { %v31_v5 = vld [vmem:[%s2034_s3] sm:$0xff]  ;;  %223 = vrot.lane.b32.xlu0 %v1676_v4, %s1614_s16  ;;  %1073 = vmatmul.mubr.msk.f32.vlgmr.msra.gmra.mrb[0].mxu0 %vm86_vm1, %v71_v2  ;;  %v38_v15 = vld [vmem:[%s2034_s3 + $0x38] sm:$0xff]  ;;  %v40_v18 = vld [vmem:[%s2034_s3 + $0x48] sm:$0xff] }
   0x5   :  { %v1685_v7 = vpack.c.bf16 %v32_v6, %v31_v5  ;;  %1407 = vmatprep.subr.bf16.mxu0 %v1613_v3  ;;  %v35_v11 = vld [vmem:[%s2034_s3 + $0x20] sm:$0xff]  ;;  %v1720_v16 = vpack.c.bf16 %v38_v15, %v37_v14  ;;  %v72_v20 = vld [vmem:[%s2032_s0 + $0x10] sm:$0xff]  ;;  %v42_v22 = vld [vmem:[%s2034_s3 + $0x58] sm:$0xff] }
   0x6   :  { %v1708_v13 = vpack.c.bf16 %v36_v12, %v35_v11  ;;  %v39_v17 = vld [vmem:[%s2034_s3 + $0x40] sm:$0xff]  ;;  %v41_v21 = vld [vmem:[%s2034_s3 + $0x50] sm:$0xff]  ;;  %1075 = vmatprep.mubr.msk.f32.mxu0 %vm86_vm1, %v72_v20  ;;  %v73_v23 = vld [vmem:[%s2032_s0 + $0x18] sm:$0xff] }
   0x7   :  { %1385 = vmatpush3.bf16.msra.mxu1 %v1685_v7  ;;  %1409 = vmatpush3.bf16.msra.mxu0 %v1685_v7  ;;  %v1735_v19 = vpack.c.bf16 %v40_v18, %v39_v17  ;;  %v1754_v24 = vpack.c.bf16 %v42_v22, %v41_v21  ;;  %v74_v25 = vld [vmem:[%s2032_s0 + $0x20] sm:$0xff]  ;;  %v75_v26 = vld [vmem:[%s2032_s0 + $0x28] sm:$0xff]  ;;  %v76_v29 = vld [vmem:[%s2032_s0 + $0x30] sm:$0xff] }
   0x8   :  { %1386 = vmatprep.subr.bf16.mxu1 %v1613_v3  ;;  %1410 = vmatprep.subr.bf16.mxu0 %v1613_v3  ;;  %v43_v27 = vld [vmem:[%s2034_s3 + $0x60] sm:$0xff]  ;;  %v44_v28 = vld [vmem:[%s2034_s3 + $0x68] sm:$0xff]  ;;  %v45_v31 = vld [vmem:[%s2034_s3 + $0x70] sm:$0xff] }
   0x9   :  { %1076 = vmatmul.mubr.msk.f32.gmra.mrb[2].mxu0 %vm86_vm1, %v73_v23  ;;  %v1776_v30 = vpack.c.bf16 %v44_v28, %v43_v27  ;;  %v46_v32 = vld [vmem:[%s2034_s3 + $0x78] sm:$0xff]  ;;  %v1808_v36 = vld [vmem:[%s2035_s2] ss:$0 sm:$0xff]  ;;  %v48_v17 = vld [vmem:[%s2036_s4 + $0x8] sm:$0xff] }
   0xa   :  { %1078 = vmatprep.mubr.msk.f32.mxu0 %vm86_vm1, %v74_v25  ;;  %v77_v34 = vld [vmem:[%s2032_s0 + $0x38] sm:$0xff]  ;;  %v1793_v35 = vpack.c.bf16 %v46_v32, %v45_v31  ;;  %v49_v18 = vld [vmem:[%s2036_s4 + $0x10] sm:$0xff]  ;;  %v51_v22 = vld [vmem:[%s2036_s4 + $0x20] sm:$0xff] }
   0xb   :  { %1388 = vmatpush3.bf16.msra.mxu1 %v1696_v10  ;;  %1412 = vmatpush3.bf16.msra.mxu0 %v1696_v10  ;;  %v50_v20 = vld [vmem:[%s2036_s4 + $0x18] sm:$0xff]  ;;  %v52_v23 = vld [vmem:[%s2036_s4 + $0x28] sm:$0xff]  ;;  %v53_v25 = vld [vmem:[%s2036_s4 + $0x30] sm:$0xff] }
   0xc   :  { %1389 = vmatprep.subr.bf16.mxu1 %v1613_v3  ;;  %1413 = vmatprep.subr.bf16.mxu0 %v1613_v3  ;;  %v1555_v21 = vpack.c.bf16 %v50_v20, %v49_v18  ;;  %v55_v28 = vld [vmem:[%s2036_s4 + $0x40] sm:$0xff] }
   0xd   :  { %1079 = vmatmul.mubr.msk.f32.gmra.mrb[4].mxu0 %vm86_vm1, %v75_v26  ;;  %v54_v26 = vld [vmem:[%s2036_s4 + $0x38] sm:$0xff] }
   0xe   :  { %1081 = vmatprep.mubr.msk.f32.mxu0 %vm86_vm1, %v76_v29  ;;  %v1561_v27 = vpack.c.bf16 %v54_v26, %v53_v25  ;;  %v56_v29 = vld [vmem:[%s2036_s4 + $0x48] sm:$0xff] }
   0xf   :  { %1391 = vmatpush3.bf16.msra.mxu1 %v1708_v13  ;;  %1415 = vmatpush3.bf16.msra.mxu0 %v1708_v13 }
  0x10   :  { %1392 = vmatprep.subr.bf16.mxu1 %v1613_v3  ;;  %1416 = vmatprep.subr.bf16.mxu0 %v1613_v3 }
  0x11   :  { %1082 = vmatmul.mubr.msk.f32.gmra.mrb[6].mxu0 %vm86_vm1, %v77_v34 }
  0x12   :  { %1151 = vmatprep.mubr.msk.f32.mxu0 %vm1615_vm2, %v1616_v33 }
  0x13   :  { %1394 = vmatpush3.bf16.msra.mxu1 %v1720_v16  ;;  %1418 = vmatpush3.bf16.msra.mxu0 %v1720_v16 }
  0x14   :  { %1395 = vmatprep.subr.bf16.mxu1 %v1613_v3  ;;  %1419 = vmatprep.subr.bf16.mxu0 %v1613_v3 }
  0x17   :  { %1397 = vmatpush3.bf16.msra.mxu1 %v1735_v19  ;;  %1421 = vmatpush3.bf16.msra.mxu0 %v1735_v19 }
  0x18   :  { %1398 = vmatprep.subr.bf16.mxu1 %v1613_v3  ;;  %1422 = vmatprep.subr.bf16.mxu0 %v1613_v3 }
  0x1b   :  { %1400 = vmatpush3.bf16.msra.mxu1 %v1754_v24  ;;  %1424 = vmatpush3.bf16.msra.mxu0 %v1754_v24 }
  0x1c   :  { %1401 = vmatprep.subr.bf16.mxu1 %v1613_v3  ;;  %1425 = vmatprep.subr.bf16.mxu0 %v1613_v3 }
  0x1f   :  { %1403 = vmatpush3.bf16.msra.mxu1 %v1776_v30  ;;  %1427 = vmatpush3.bf16.msra.mxu0 %v1776_v30 }
  0x20   :  { %1404 = vmatprep.subr.bf16.mxu1 %v1613_v3  ;;  %1428 = vmatprep.subr.bf16.mxu0 %v1613_v3 }
  0x23   :  { %1406 = vmatpush3.bf16.msra.mxu1 %v1793_v35  ;;  %1430 = vmatpush3.bf16.msra.mxu0 %v1793_v35 }
  0x24   :  { %1431 = vmatprep.subr.bf16.mxu1 %v1613_v3  ;;  %1455 = vmatprep.subr.bf16.mxu0 %v1613_v3 }
  0x76   :  { %v1839_v48 = vpop.permute.xlu0 %223 }
  0xd7   :  { %v1074_v37 = vpop.f32.mrb[0].mxu0 }
  0xd8   :  { %v181_v38 = vpop.f32.mrb[1].mxu0  ;;  %v187_v47 = vadd.f32 %v1074_v37, %v1808_v36 }
  0xd9   :  { %v182_v39 = vadd.f32 %v1808_v36, %v181_v38 }
  0xda   :  { %v226_v49 = vsel %vm221_vm3, %v187_v47, %v1839_v48 }
  0xdb   :  { %1591 = vtanh.f32 %v182_v39  ;;  %v57_v39 = vld [vmem:[%s2036_s4 + $0x50] sm:$0xff] }
  0xdc   :  { %v1077_v41 = vpop.f32.mrb[2].mxu0 }
  0xdd   :  { %v191_v42 = vpop.f32.mrb[3].mxu0  ;;  %v197_v60 = vadd.f32 %v1077_v41, %v1808_v36 }
  0xde   :  { %v192_v54 = vadd.f32 %v1808_v36, %v191_v42  ;;  %v59_v42 = vld [vmem:[%s2036_s4 + $0x60] sm:$0xff] }
  0xdf   :  { %v228_v61 = vsel %vm221_vm3, %v197_v60, %v1839_v48 }
  0xe0   :  { %v1830_v43 = vpop.f32.mrb[4].mxu0  ;;  %v227_v55 = vsel %vm221_vm3, %v192_v54, %v1839_v48 }
  0xe1   :  { %v1832_v44 = vpop.f32.mrb[5].mxu0 }
  0xe2   :  { %v202_v2 = vadd.f32 %v1808_v36, %v1832_v44  ;;  %v61_v44 = vld [vmem:[%s2036_s4 + $0x70] sm:$0xff] }
  0xe4   :  { %v1834_v45 = vpop.f32.mrb[6].mxu0  ;;  %v229_v5 = vsel %vm221_vm3, %v202_v2, %v1839_v48 }
  0xe5   :  { %v1592_v40 = vpop.eup %1591  ;;  %v1836_v46 = vpop.f32.mrb[7].mxu0 }
  0xe6   :  { %1117 = vmatmul.mubr.msk.f32.vlgmr.msra.gmra.mrb[0].mxu1 %vm221_vm3, %v1592_v40  ;;  %v212_v31 = vadd.f32 %v1808_v36, %v1836_v46  ;;  %v58_v40 = vld [vmem:[%s2036_s4 + $0x58] sm:$0xff] }
  0xe7   :  { %1433 = vmatpush3.bf16.msra.mxu1 %v1685_v7  ;;  %1186 = vmatprep.mubr.msk.f32.mxu1 %vm1615_vm2, %v1616_v33  ;;  %v1567_v41 = vpack.c.bf16 %v58_v40, %v57_v39  ;;  %v62_v46 = vld [vmem:[%s2036_s4 + $0x78] sm:$0xff] }
  0xe8   :  { %1434 = vmatprep.subr.bf16.mxu1 %v1613_v3  ;;  %v231_v32 = vsel %vm221_vm3, %v212_v31, %v1839_v48  ;;  %v1573_v47 = vpack.c.bf16 %v62_v46, %v61_v44 }
  0xeb   :  { %1436 = vmatpush3.bf16.msra.mxu1 %v1696_v10 }
  0xec   :  { %1437 = vmatprep.subr.bf16.mxu1 %v1613_v3 }
  0xef   :  { %1439 = vmatpush3.bf16.msra.mxu1 %v1708_v13 }
  0xf0   :  { %1440 = vmatprep.subr.bf16.mxu1 %v1613_v3 }
  0xf3   :  { %1442 = vmatpush3.bf16.msra.mxu1 %v1720_v16 }
  0xf4   :  { %1443 = vmatprep.subr.bf16.mxu1 %v1613_v3 }
  0xf7   :  { %1445 = vmatpush3.bf16.msra.mxu1 %v1735_v19 }
  0xf8   :  { %1446 = vmatprep.subr.bf16.mxu1 %v1613_v3 }
  0xfb   :  { %1448 = vmatpush3.bf16.msra.mxu1 %v1754_v24 }
  0xfc   :  { %1449 = vmatprep.subr.bf16.mxu1 %v1613_v3 }
  0xff   :  { %1451 = vmatpush3.bf16.msra.mxu1 %v1776_v30 }
 0x100   :  { %1452 = vmatprep.subr.bf16.mxu1 %v1613_v3 }
 0x103   :  { %1454 = vmatpush3.bf16.msra.mxu1 %v1793_v35 }
 0x104   :  { %1479 = vmatprep.subr.bf16.mxu1 %v1613_v3 }
 0x1b9   :  { %v299_v50 = vpop.f32.mrb[0].mxu1 }
 0x1ba   :  { %v300_v51 = vadd.f32 %v299_v50, %v226_v49  ;;  %v1118_v52 = vpop.f32.mrb[1].mxu1  ;;  %v801_v49 = vld [vmem:[%s2037_s6] sm:$0xff]  ;;  %v802_v50 = vld [vmem:[%s2037_s6 + $0x8] sm:$0xff] }
 0x1bb   :  { %v217_v52 = vadd.f32 %v1834_v45, %v1808_v36  ;;  %v806_v45 = vld [vmem:[%s2037_s6 + $0x28] sm:$0xff] }
 0x1bc   :  { %1593 = vtanh.f32 %v300_v51  ;;  %v1576_v51 = vpack.c.bf16 %v802_v50, %v801_v49 }
 0x1c6   :  { %v1594_v53 = vpop.eup %1593 }
 0x1c7   :  { %1152 = vmatmul.mubr.f32.vlgmr.msra.gmra.mrb[8].mxu0 %v1594_v53  ;;  %v232_v53 = vsel %vm221_vm3, %v217_v52, %v1839_v48 }
 0x1c8   :  { %1457 = vmatpush3.bf16.msra.mxu0 %v1685_v7  ;;  %1221 = vmatprep.mubr.msk.f32.mxu0 %vm1615_vm2, %v1616_v33 }
 0x1c9   :  { %1458 = vmatprep.subr.bf16.mxu0 %v1613_v3 }
 0x1cc   :  { %1460 = vmatpush3.bf16.msra.mxu0 %v1696_v10 }
 0x1cd   :  { %1461 = vmatprep.subr.bf16.mxu0 %v1613_v3 }
 0x1d0   :  { %1463 = vmatpush3.bf16.msra.mxu0 %v1708_v13 }
 0x1d1   :  { %1464 = vmatprep.subr.bf16.mxu0 %v1613_v3 }
 0x1d4   :  { %1466 = vmatpush3.bf16.msra.mxu0 %v1720_v16 }
 0x1d5   :  { %1467 = vmatprep.subr.bf16.mxu0 %v1613_v3 }
 0x1d8   :  { %1469 = vmatpush3.bf16.msra.mxu0 %v1735_v19 }
 0x1d9   :  { %1470 = vmatprep.subr.bf16.mxu0 %v1613_v3 }
 0x1dc   :  { %1472 = vmatpush3.bf16.msra.mxu0 %v1754_v24 }
 0x1dd   :  { %1473 = vmatprep.subr.bf16.mxu0 %v1613_v3 }
 0x1e0   :  { %1475 = vmatpush3.bf16.msra.mxu0 %v1776_v30 }
 0x1e1   :  { %1476 = vmatprep.subr.bf16.mxu0 %v1613_v3 }
 0x1e4   :  { %1478 = vmatpush3.bf16.msra.mxu0 %v1793_v35 }
 0x1e5   :  { %1503 = vmatprep.subr.bf16.mxu0 %v1613_v3 }
 0x29a   :  { %v370_v56 = vpop.f32.mrb[8].mxu0 }
 0x29b   :  { %v371_v57 = vadd.f32 %v370_v56, %v227_v55  ;;  %v1153_v58 = vpop.f32.mrb[9].mxu0 }
 0x29c   :  { %v803_v58 = vld [vmem:[%s2037_s6 + $0x10] sm:$0xff] }
 0x29d   :  { %1595 = vtanh.f32 %v371_v57 }
 0x2a7   :  { %v1596_v59 = vpop.eup %1595 }
 0x2a8   :  { %1187 = vmatmul.mubr.f32.vlgmr.msra.gmra.mrb[2].mxu1 %v1596_v59  ;;  %v804_v59 = vld [vmem:[%s2037_s6 + $0x18] sm:$0xff] }
 0x2a9   :  { %1481 = vmatpush3.bf16.msra.mxu1 %v1685_v7  ;;  %1256 = vmatprep.mubr.msk.f32.mxu1 %vm1615_vm2, %v1616_v33  ;;  %v1579_v60 = vpack.c.bf16 %v804_v59, %v803_v58 }
 0x2aa   :  { %1482 = vmatprep.subr.bf16.mxu1 %v1613_v3 }
 0x2ad   :  { %1484 = vmatpush3.bf16.msra.mxu1 %v1696_v10 }
 0x2ae   :  { %1485 = vmatprep.subr.bf16.mxu1 %v1613_v3 }
 0x2b1   :  { %1487 = vmatpush3.bf16.msra.mxu1 %v1708_v13 }
 0x2b2   :  { %1488 = vmatprep.subr.bf16.mxu1 %v1613_v3 }
 0x2b5   :  { %1490 = vmatpush3.bf16.msra.mxu1 %v1720_v16 }
 0x2b6   :  { %1491 = vmatprep.subr.bf16.mxu1 %v1613_v3 }
 0x2b9   :  { %1493 = vmatpush3.bf16.msra.mxu1 %v1735_v19 }
 0x2ba   :  { %1494 = vmatprep.subr.bf16.mxu1 %v1613_v3 }
 0x2bd   :  { %1496 = vmatpush3.bf16.msra.mxu1 %v1754_v24 }
 0x2be   :  { %1497 = vmatprep.subr.bf16.mxu1 %v1613_v3 }
 0x2c1   :  { %1499 = vmatpush3.bf16.msra.mxu1 %v1776_v30 }
 0x2c2   :  { %1500 = vmatprep.subr.bf16.mxu1 %v1613_v3 }
 0x2c5   :  { %1502 = vmatpush3.bf16.msra.mxu1 %v1793_v35 }
 0x2c6   :  { %1527 = vmatprep.subr.bf16.mxu1 %v1613_v3 }
 0x37b   :  { %v441_v62 = vpop.f32.mrb[2].mxu1 }
 0x37c   :  { %v442_v63 = vadd.f32 %v441_v62, %v228_v61  ;;  %v1188_v0 = vpop.f32.mrb[3].mxu1  ;;  %v807_v61 = vld [vmem:[%s2037_s6 + $0x30] sm:$0xff]  ;;  %v808_v62 = vld [vmem:[%s2037_s6 + $0x38] sm:$0xff] }
 0x37d   :  { %v13_v0 = vstv %s2038_s7 }
 0x37e   :  { %1597 = vtanh.f32 %v442_v63  ;;  %v1585_v63 = vpack.c.bf16 %v808_v62, %v807_v61  ;;  %14 = vst [vmem:[#allocation2] sm:$0x1] %v13_v0 }
 0x388   :  { %v1598_v1 = vpop.eup %1597 }
 0x389   :  { %1222 = vmatmul.mubr.f32.vlgmr.msra.gmra.mrb[10].mxu0 %v1598_v1 }
 0x38a   :  { %1505 = vmatpush3.bf16.msra.mxu0 %v1685_v7  ;;  %1291 = vmatprep.mubr.msk.f32.mxu0 %vm1615_vm2, %v1616_v33 }
 0x38b   :  { %1506 = vmatprep.subr.bf16.mxu0 %v1613_v3 }
 0x38e   :  { %1508 = vmatpush3.bf16.msra.mxu0 %v1696_v10 }
 0x38f   :  { %1509 = vmatprep.subr.bf16.mxu0 %v1613_v3 }
 0x392   :  { %1511 = vmatpush3.bf16.msra.mxu0 %v1708_v13 }
 0x393   :  { %1512 = vmatprep.subr.bf16.mxu0 %v1613_v3 }
 0x396   :  { %1514 = vmatpush3.bf16.msra.mxu0 %v1720_v16 }
 0x397   :  { %1515 = vmatprep.subr.bf16.mxu0 %v1613_v3 }
 0x39a   :  { %1517 = vmatpush3.bf16.msra.mxu0 %v1735_v19 }
 0x39b   :  { %1518 = vmatprep.subr.bf16.mxu0 %v1613_v3 }
 0x39e   :  { %1520 = vmatpush3.bf16.msra.mxu0 %v1754_v24 }
 0x39f   :  { %1521 = vmatprep.subr.bf16.mxu0 %v1613_v3 }
 0x3a2   :  { %1523 = vmatpush3.bf16.msra.mxu0 %v1776_v30 }
 0x3a3   :  { %1524 = vmatprep.subr.bf16.mxu0 %v1613_v3 }
 0x3a6   :  { %1526 = vmatpush3.bf16.msra.mxu0 %v1793_v35 }
 0x3a7   :  { %1551 = vmatprep.subr.bf16.mxu0 %v1613_v3 }
 0x45c   :  { %v512_v6 = vpop.f32.mrb[10].mxu0 }
 0x45d   :  { %v513_v8 = vadd.f32 %v512_v6, %v229_v5  ;;  %v1223_v9 = vpop.f32.mrb[11].mxu0 }
 0x45f   :  { %1599 = vtanh.f32 %v513_v8  ;;  %v913_v8 = vld [vmem:[#allocation2] ss:$0 sm:$0xff] }
 0x469   :  { %v1600_v11 = vpop.eup %1599 }
 0x46a   :  { %1257 = vmatmul.mubr.f32.vlgmr.msra.gmra.mrb[4].mxu1 %v1600_v11 }
 0x46b   :  { %1529 = vmatpush3.bf16.msra.mxu1 %v1685_v7  ;;  %1326 = vmatprep.mubr.msk.f32.mxu1 %vm1615_vm2, %v1616_v33  ;;  %v207_v7 = vadd.f32 %v1830_v43, %v1808_v36  ;;  %v60_v43 = vld [vmem:[%s2036_s4 + $0x68] sm:$0xff]  ;;  %v805_v36 = vld [vmem:[%s2037_s6 + $0x20] sm:$0xff] }
 0x46c   :  { %1530 = vmatprep.subr.bf16.mxu1 %v1613_v3 }
 0x46f   :  { %1532 = vmatpush3.bf16.msra.mxu1 %v1696_v10  ;;  %v230_v10 = vsel %vm221_vm3, %v207_v7, %v1839_v48  ;;  %v1582_v48 = vpack.c.bf16 %v806_v45, %v805_v36 }
 0x470   :  { %1533 = vmatprep.subr.bf16.mxu1 %v1613_v3 }
 0x473   :  { %1535 = vmatpush3.bf16.msra.mxu1 %v1708_v13 }
 0x474   :  { %1536 = vmatprep.subr.bf16.mxu1 %v1613_v3 }
 0x477   :  { %1538 = vmatpush3.bf16.msra.mxu1 %v1720_v16  ;;  %v47_v16 = vld [vmem:[%s2036_s4] sm:$0xff] }
 0x478   :  { %1539 = vmatprep.subr.bf16.mxu1 %v1613_v3 }
 0x47b   :  { %1541 = vmatpush3.bf16.msra.mxu1 %v1735_v19  ;;  %v1552_v19 = vpack.c.bf16 %v48_v17, %v47_v16 }
 0x47c   :  { %1542 = vmatprep.subr.bf16.mxu1 %v1613_v3 }
 0x47f   :  { %1544 = vmatpush3.bf16.msra.mxu1 %v1754_v24  ;;  %v1558_v24 = vpack.c.bf16 %v52_v23, %v51_v22 }
 0x480   :  { %1545 = vmatprep.subr.bf16.mxu1 %v1613_v3 }
 0x483   :  { %1547 = vmatpush3.bf16.msra.mxu1 %v1776_v30  ;;  %v1564_v30 = vpack.c.bf16 %v56_v29, %v55_v28 }
 0x484   :  { %1548 = vmatprep.subr.bf16.mxu1 %v1613_v3 }
 0x487   :  { %1550 = vmatpush3.bf16.msra.mxu1 %v1793_v35 }
 0x488   :  { %1575 = vmatprep.subr.bf16.mxu1 %v1613_v3 }
 0x53d   :  { %v583_v12 = vpop.f32.mrb[4].mxu1 }
 0x53e   :  { %v584_v13 = vadd.f32 %v583_v12, %v230_v10  ;;  %v1258_v14 = vpop.f32.mrb[5].mxu1 }
 0x540   :  { %1601 = vtanh.f32 %v584_v13 }
 0x54a   :  { %v1602_v15 = vpop.eup %1601 }
 0x54b   :  { %1292 = vmatmul.mubr.f32.vlgmr.msra.gmra.mrb[12].mxu0 %v1602_v15 }
 0x54c   :  { %1361 = vmatprep.mubr.msk.f32.mxu0 %vm1615_vm2, %v1616_v33  ;;  %1553 = vmatpush3.bf16.msra.mxu0 %v1552_v19 }
 0x54d   :  { %1554 = vmatprep.subr.bf16.mxu0 %v1613_v3 }
 0x550   :  { %1556 = vmatpush3.bf16.msra.mxu0 %v1555_v21 }
 0x551   :  { %1557 = vmatprep.subr.bf16.mxu0 %v1613_v3 }
 0x554   :  { %1559 = vmatpush3.bf16.msra.mxu0 %v1558_v24 }
 0x555   :  { %1560 = vmatprep.subr.bf16.mxu0 %v1613_v3 }
 0x558   :  { %1562 = vmatpush3.bf16.msra.mxu0 %v1561_v27 }
 0x559   :  { %1563 = vmatprep.subr.bf16.mxu0 %v1613_v3 }
 0x55c   :  { %1565 = vmatpush3.bf16.msra.mxu0 %v1564_v30 }
 0x55d   :  { %1566 = vmatprep.subr.bf16.mxu0 %v1613_v3 }
 0x560   :  { %1568 = vmatpush3.bf16.msra.mxu0 %v1567_v41 }
 0x561   :  { %1569 = vmatprep.subr.bf16.mxu0 %v1613_v3 }
 0x61e   :  { %v654_v34 = vpop.f32.mrb[12].mxu0 }
 0x61f   :  { %v655_v35 = vadd.f32 %v654_v34, %v231_v32  ;;  %v1293_v37 = vpop.f32.mrb[13].mxu0 }
 0x621   :  { %1603 = vtanh.f32 %v655_v35 }
 0x62b   :  { %v1604_v38 = vpop.eup %1603 }
 0x62c   :  { %1327 = vmatmul.mubr.f32.vlgmr.msra.gmra.mrb[6].mxu1 %v1604_v38 }
 0x62d   :  { %1380 = vmatprep.mubr.msk.f32.mxu1 %vm1615_vm2, %v1616_v33  ;;  %v1570_v33 = vpack.c.bf16 %v60_v43, %v59_v42  ;;  %1577 = vmatpush3.bf16.msra.mxu1 %v1576_v51 }
 0x62e   :  { %1578 = vmatprep.subr.bf16.mxu1 %v1613_v3 }
 0x62f   :  { %1571 = vmatpush3.bf16.msra.mxu0 %v1570_v33 }
 0x630   :  { %1572 = vmatprep.subr.bf16.mxu0 %v1613_v3 }
 0x631   :  { %1580 = vmatpush3.bf16.msra.mxu1 %v1579_v60 }
 0x632   :  { %1581 = vmatprep.subr.bf16.mxu1 %v1613_v3 }
 0x633   :  { %1574 = vmatpush3.bf16.msra.mxu0 %v1573_v47 }
 0x635   :  { %1583 = vmatpush3.bf16.msra.mxu1 %v1582_v48 }
 0x636   :  { %1584 = vmatprep.subr.bf16.mxu1 %v1613_v3 }
 0x639   :  { %1586 = vmatpush3.bf16.msra.mxu1 %v1585_v63 }
 0x6ff   :  { %v725_v54 = vpop.f32.mrb[6].mxu1 }
 0x700   :  { %v726_v55 = vadd.f32 %v725_v54, %v232_v53  ;;  %v1328_v56 = vpop.f32.mrb[7].mxu1 }
 0x702   :  { %1605 = vtanh.f32 %v726_v55 }
 0x70c   :  { %v1606_v57 = vpop.eup %1605 }
 0x70d   :  { %1362 = vmatmul.mubr.f32.vlgmr.msra.gmra.mrb[14].mxu0 %v1606_v57 }
 0x7e0   :  { %v796_v1 = vpop.f32.mrb[14].mxu0 }
 0x7e1   :  { %v797_v2 = vadd.f32 %v1676_v4, %v796_v1  ;;  %v1363_v5 = vpop.f32.mrb[15].mxu0 }
 0x7e3   :  { %1607 = vtanh.f32 %v797_v2 }
 0x7ed   :  { %v1608_v6 = vpop.eup %1607 }
 0x7ee   :  { %1381 = vmatmul.mubr.msk.f32.vlgmr.msra.gmra.mrb[8].mxu1 %vm221_vm3, %v1608_v6 }
 0x8c1   :  { %v885_v9 = vpop.f32.mrb[8].mxu1 }
 0x8c2   :  { %v886_v11 = vadd.f32 %v913_v8, %v885_v9  ;;  %v1382_v7 = vpop.f32.mrb[9].mxu1 }
 0x8c4   :  { %v915_v10 = vmul.f32 -1.442695, %v886_v11 }
 0x8c6   :  { %1609 = vpow2.f32 %v915_v10 }
 0x8d0   :  { %v1610_v3 = vpop.eup %1609 }
 0x8d1   :  { %v892_v12 = vadd.f32 1.0, %v1610_v3 }
 0x8d3   :  { %1611 = vrcp.f32 %v892_v12 }
 0x8dd   :  { %v1612_v13 = vpop.eup %1611 }
 0x8de   :  { %896 = vst.msk [vmem:[%s2039_s8] sm:$0xff] %vm895_vm4, %v1612_v13 }

</bundles_post_ra>
